<compile_context>
chip_gen: v5e
topology: v5e:2x2
jax: 0.10.0
libtpu: 0.0.40
codegen_flags: <defaults>
</compile_context>

<pallas_src>
import jax
import jax.numpy as jnp
from jax.experimental import pallas as pl
from jax.experimental.pallas import tpu as pltpu

# Module constants from the PyTorch source
N = 19
k = 5
n = 20

# Padded layout constants (sublane multiple of 8, lane multiple of 128)
M_PAD = 24          # n=20 -> 24 rows for the output / p slab region
K_PAD = 8           # k=5  -> 8 (sublane-aligned contraction pad; zeros)
N_PAD = 128         # N=19 -> 128 lanes (lane-dense output, unmasked stores)
SLAB_ROWS = M_PAD + K_PAD   # 32: p region rows [0, 24), u region rows [24, 32)


def _mf_kernel(pk_ref, o_ref):
    # Static, aligned slices of the single packed VMEM slab.
    p_pad = pk_ref[:M_PAD, :K_PAD]          # (24, 8): p in top-left, zeros elsewhere
    u_pad = pk_ref[M_PAD:SLAB_ROWS, :]      # (8, 128): u in top-left, zeros elsewhere
    # Single MXU matmul, f32 accumulation. Zero padding in K contributes 0,
    # so o[:20, :19] == p @ u exactly; the rest of the slab is 0.
    o_ref[...] = jnp.dot(p_pad, u_pad, preferred_element_type=jnp.float32)


def pack_params(p, u):
    """Pack p (n,k) and u (k,N) into one zero-padded (32,128) f32 slab.

    Done once at parameter-storage time so the forward pass issues a single
    input DMA instead of two.
    """
    slab = jnp.zeros((SLAB_ROWS, N_PAD), jnp.float32)
    slab = slab.at[: p.shape[0], : p.shape[1]].set(p.astype(jnp.float32))
    slab = slab.at[M_PAD : M_PAD + u.shape[0], : u.shape[1]].set(u.astype(jnp.float32))
    return slab


def mf_forward_packed(packed):
    """Run the kernel on the pre-packed parameter slab -> padded (24,128) out."""
    return pl.pallas_call(
        _mf_kernel,
        out_shape=jax.ShapeDtypeStruct((M_PAD, N_PAD), jnp.float32),
        in_specs=[pl.BlockSpec(memory_space=pltpu.VMEM)],
        out_specs=pl.BlockSpec(memory_space=pltpu.VMEM),
        cost_estimate=pl.CostEstimate(
            flops=2 * n * k * N,
            transcendentals=0,
            bytes_accessed=4 * (n * k + k * N + n * N),
        ),
    )(packed)


def mf_forward(p, u):
    """Module-equivalent forward: returns p @ u with shape (n, N).

    Packing would normally be done once when the parameters are created; it is
    included here only so this function mirrors MF.forward()'s signature.
    """
    packed = pack_params(p, u)
    out_pad = mf_forward_packed(packed)
    # Slice outside the kernel (lane-dense writeback inside; XLA fuses this
    # slice into whatever consumes the result).
    return out_pad[:n, :N]


if __name__ == "__main__":
    # Deterministic parameter init (mirrors torch.rand: uniform [0, 1)).
    key = jax.random.PRNGKey(0)
    kp, ku = jax.random.split(key)
    p = jax.random.uniform(kp, (n, k), dtype=jnp.float32)
    u = jax.random.uniform(ku, (k, N), dtype=jnp.float32)

    # Pack once (parameter storage form), run the kernel once.
    packed = pack_params(p, u)
    out_pad = jax.block_until_ready(mf_forward_packed(packed))
    out = out_pad[:n, :N]

    # Correctness checks against plain JAX reference.
    ref = p @ u
    assert out.shape == (n, N), out.shape
    assert jnp.allclose(out, ref, atol=1e-5, rtol=1e-5), "mismatch vs reference"
    # Padded region must be exactly zero (zero K-padding guarantees it).
    assert jnp.all(out_pad[n:, :] == 0.0) and jnp.all(out_pad[:, N:] == 0.0)

    # Also exercise the module-mirroring wrapper.
    out2 = jax.block_until_ready(mf_forward(p, u))
    assert jnp.allclose(out2, ref, atol=1e-5, rtol=1e-5)

    print("KERNEL_OK")
</pallas_src>

<mosaic_0001>
module attributes {stable_mosaic.version = 11 : i64} {
  func.func @_mf_kernel(%arg0: memref<32x128xf32, #tpu.memory_space<vmem>>, %arg1: memref<24x128xf32, #tpu.memory_space<vmem>>) attributes {dimension_semantics = [], scalar_prefetch = 0 : i64, scratch_operands = 0 : i64, tpu.core_type = #tpu.core_type<tc>} {
    %c0 = arith.constant 0 : index
    %c0_0 = arith.constant 0 : index
    %0 = vector.load %arg0[%c0, %c0_0] : memref<32x128xf32, #tpu.memory_space<vmem>>, vector<24x8xf32>
    %c24 = arith.constant 24 : index
    %c0_1 = arith.constant 0 : index
    %1 = vector.load %arg0[%c24, %c0_1] : memref<32x128xf32, #tpu.memory_space<vmem>>, vector<8x128xf32>
    %cst = arith.constant dense<0.000000e+00> : vector<24x128xf32>
    %2 = tpu.matmul %0, %1, %cst {dimension_numbers = #tpu.dot_dimension_numbers<[1], [0], [0], [1], [0, 0, 1, 1], [], []>} : vector<24x8xf32>, vector<8x128xf32>, vector<24x128xf32> -> vector<24x128xf32>
    %c0_2 = arith.constant 0 : index
    %c0_3 = arith.constant 0 : index
    %3 = vector.load %arg1[%c0_2, %c0_3] : memref<24x128xf32, #tpu.memory_space<vmem>>, vector<24x128xf32>
    tpu.vector_store %arg1[%c0_2, %c0_3], %2 {strides = array<i32>} : memref<24x128xf32, #tpu.memory_space<vmem>>, vector<24x128xf32>,
    return
  }
}

</mosaic_0001>

<bundles_post_ra>
// kernel: tpu_custom_call.1
= control target key start
LH: loop header
LB: loop body
LE: loop exit
PB: predicated region body
PF: predicated region fallthrough
CT: control target
= control target key end

     0   :  { %6 = vsyncpa [#allocation3], 0  ;;  %s174_s0 = inlined_call_operand.hbm [shape: f32[32,128], index: 0, kind: input, shape index: {}]   ;;  %s175_s1 = inlined_call_operand.hbm [shape: f32[24,128], index: 1, kind: output, shape index: {}]  }
   0x1   :  { %7 = vsyncpa [#allocation4], 0  ;;  %s12_s8 = sshll.u32 %s174_s0, 4  ;;  %s148_s9 = smov [#allocation2]   ;;  %s13_s8 = int_to_ptr.hbm [resolvable:$true] %s12_s8 }
   0x2   :  { %s14_s10 = sshll.u32 %s148_s9, 4  ;;  %s149_s11 = smov 128   ;;  %s15_s10 = int_to_ptr.vmem [resolvable:$true] %s14_s10 }
   0x3   :  { %s150_s12 = smov 8  }
   0x4   :  { %20 = dma.hbm_to_vmem [thread:$0]  %s13_s8, 512, %s15_s10, [#allocation3], %s149_s11, %s149_s11, %s150_s12  }
   0x5   :  { %144 = dma.done.wait [#allocation3], 512  }
   0x6   :  { %145 = vsyncadd [#allocation3], 4294966784  ;;  %vm29_vm0 = vcmask 64512   ;;  %v28_v0 = vld [vmem:[#allocation2 + $0x18] sm:$0xff]  ;;  %v27_v1 = vld [vmem:[#allocation2 + $0x10] sm:$0xff]  ;;  %s151_s0 = smov [#allocation5]  }
   0x7   :  { %v25_v2 = vld [vmem:[#allocation2] sm:$0xff]  ;;  %91 = vmatpush.msra.mxu2 %v28_v0  ;;  %54 = vmatpush.msra.mxu0 %v28_v0  ;;  %v26_v3 = vld [vmem:[#allocation2 + $0x8] sm:$0xff]  ;;  %s72_s13 = sshll.u32 %s151_s0, 4  ;;  %s74_s16 = sshll.u32 %s175_s1, 4  ;;  %s73_s13 = int_to_ptr.vmem [resolvable:$true] %s72_s13  ;;  %s75_s16 = int_to_ptr.hbm [resolvable:$true] %s74_s16 }
   0x8   :  { %89 = vmatmul.msk.f32.vlgmr.msra.gmra.mxu2 %vm29_vm0, %v27_v1  ;;  %90 = vmatpush.msra.mxu1 %v28_v0 }
   0x9   :  { %87 = vmatmul.msk.f32.vlgmr.msra.gmra.mxu0 %vm29_vm0, %v25_v2  ;;  %88 = vmatmul.msk.f32.vlgmr.msra.gmra.mxu1 %vm29_vm0, %v26_v3 }
  0x86   :  { %v56_v4 = vpop.f32.mrf.mxu0  ;;  %v59_v5 = vpop.f32.mrf.mxu1 }
  0x87   :  { %65 = vst [vmem:[#allocation5] sm:$0xff] %v56_v4 }
  0x88   :  { %66 = vst [vmem:[#allocation5 + $0x8] sm:$0xff] %v59_v5 }
  0x8b   :  { %v62_v6 = vpop.f32.mrf.mxu2 }
  0x8c   :  { %67 = vst [vmem:[#allocation5 + $0x10] sm:$0xff] %v62_v6 }
  0x8d   :  { %80 = dma.vmem_to_hbm [thread:$0]  %s73_s13, 384, %s75_s16, [#allocation4], %s149_s11, %s149_s11, %s150_s12  }
  0x8e   :  { %146 = dma.done.wait [#allocation4], 384  }
  0x8f   :  { %147 = vsyncadd [#allocation4], 4294966912 }
  0x90   :  { %85 = vsyncpa [#allocation3], 1 }
  0x91   :  { %86 = vsyncpa [#allocation4], 1 }

</bundles_post_ra>
